<compile_context>
chip_gen: v5e
topology: v5e:2x2
jax: 0.10.0
libtpu: 0.0.40
codegen_flags: <defaults>
</compile_context>

<pallas_src>
from functools import partial

import jax
import jax.numpy as jnp
from jax.experimental import pallas as pl
from jax.experimental.pallas import tpu as pltpu


def _cdiv(a, b):
    return -(-a // b)


def channel_attention_kernel(x_ref, w1t_ref, w2t_ref, alpha_ref, out_ref,
                             acc_ref, *, inv_hw, hw_total, mask_hw_tail):
    # x_ref:     (b_tile, C, hw_tile)   input tile (input dtype)
    # w1t_ref:   (C, Cr)  f32           fc1 1x1-conv weight, pre-transposed
    # w2t_ref:   (Cr, C)  f32           fc2 1x1-conv weight, pre-transposed
    # alpha_ref: (1,) f32 in SMEM       PReLU single shared parameter
    # out_ref:   (b_tile, C)
    # acc_ref:   (2, b_tile, C) f32     [0] = running sum, [1] = running max
    b_tile = out_ref.shape[0]
    hw_block = x_ref.shape[2]
    hw_idx = pl.program_id(1)

    x = x_ref[...]                                   # keep input dtype
    if mask_hw_tail:
        # cdiv grid: mask lanes beyond HW in the tail block
        # (0 for sum, -inf for max).  Non-tail blocks: mask is all-true.
        valid = hw_total - hw_idx * hw_block
        lane = jax.lax.broadcasted_iota(jnp.int32, (1, 1, hw_block), 2)
        keep = lane < valid
        x_sum = jnp.where(keep, x, jnp.zeros((), dtype=x.dtype))
        x_max = jnp.where(keep, x, jnp.asarray(-jnp.inf, dtype=x.dtype))
    else:
        x_sum = x
        x_max = x

    part_sum = jnp.sum(x_sum, axis=-1, dtype=jnp.float32)       # (b_tile, C)
    part_max = jnp.max(x_max, axis=-1).astype(jnp.float32)      # (b_tile, C)

    @pl.when(hw_idx == 0)
    def _init():
        acc_ref[0] = part_sum
        acc_ref[1] = part_max

    @pl.when(hw_idx > 0)
    def _accumulate():
        acc_ref[0] = acc_ref[0] + part_sum
        acc_ref[1] = jnp.maximum(acc_ref[1], part_max)

    @pl.when(hw_idx == pl.num_programs(1) - 1)
    def _finalize():
        # Scale the sum slab in place -> avg; then feed the whole scratch
        # (stacked avg/max, shape (2*b_tile, C)) to fc1 in a single matmul.
        acc_ref[0] = acc_ref[0] * jnp.float32(inv_hw)
        pooled = acc_ref[...].reshape(2 * b_tile, acc_ref.shape[2])
        alpha = alpha_ref[0]
        h = jnp.dot(pooled, w1t_ref[...], preferred_element_type=jnp.float32)
        h = jnp.where(h > 0, h, alpha * h)           # PReLU (1 shared param)
        o = jnp.dot(h, w2t_ref[...], preferred_element_type=jnp.float32)
        logits = o[:b_tile] + o[b_tile:]             # avg_out + max_out
        out_ref[...] = pl.reciprocal(1.0 + jnp.exp(-logits)).astype(out_ref.dtype)


def _vmem_capacity_bytes():
    try:
        info = pltpu.get_tpu_info()
        cap = int(getattr(info, "vmem_capacity_bytes", 0) or 0)
        if cap > 0:
            return cap
    except Exception:
        pass
    return 128 << 20   # v5e/v6e default


def _select_tiles(B, C, HW, elem_bytes, target_tile_bytes, *,
                  b_tile=None, hw_tile=None):
    """hw_tile maximized first (contiguous DMA runs), b_tile from the budget."""
    b_floor = min(B, 8)
    if hw_tile is None:
        if HW <= 128 or b_floor * C * HW * elem_bytes <= target_tile_bytes:
            hw_tile = HW                              # full rows, no masking
        else:
            lanes = target_tile_bytes // (b_floor * C * elem_bytes)
            hw_tile = max(128, (lanes // 128) * 128)  # never fall back to HW
            hw_tile = min(hw_tile, (HW // 128) * 128)
    if b_tile is None:
        per_b = C * hw_tile * elem_bytes
        b_fit = max(1, target_tile_bytes // per_b)
        if B <= 8:
            # b_tile must be 8-aligned or == B (out-block sublane constraint).
            b_tile = B
        else:
            b_tile = max(8, (min(B, b_fit) // 8) * 8)
            if b_tile >= B:
                # Megacore: keep >= 2 blocks on the parallel B axis when the
                # split stays 8-aligned (both v7x TensorCores stream HBM).
                half8 = ((_cdiv(B, 2) + 7) // 8) * 8
                b_tile = half8 if half8 < B else B
    return b_tile, hw_tile


def channel_attention(x_nchw, w1, w2, alpha, *, b_tile=None, hw_tile=None,
                      target_tile_bytes=None, x_buffer_count=None):
    """x_nchw: (B, C, H, W); w1: (C//16, C); w2: (C, C//16); alpha: scalar."""
    B, C, H, W = x_nchw.shape
    HW = H * W
    Cr = w1.shape[0]

    x_flat = x_nchw.reshape(B, C, HW)
    elem_bytes = x_flat.dtype.itemsize

    # Generation-aware budgets.
    cap = _vmem_capacity_bytes()
    cap_limit = max(32 << 20, min(int(0.75 * cap), 100 << 20))   # ~48 MiB on v7x
    if target_tile_bytes is None:
        target_tile_bytes = (8 << 20) if cap <= (64 << 20) else (16 << 20)

    b_tile, hw_tile = _select_tiles(B, C, HW, elem_bytes, target_tile_bytes,
                                    b_tile=b_tile, hw_tile=hw_tile)
    assert hw_tile == HW or hw_tile % 128 == 0
    assert 1 <= b_tile <= B and 1 <= hw_tile <= HW

    grid = (_cdiv(B, b_tile), _cdiv(HW, hw_tile))
    mask_hw_tail = (HW % hw_tile) != 0
    # B tail (B % b_tile != 0) needs no mask: padded rows read unspecified
    # data but every computation is row-independent and their output rows are
    # discarded at the store boundary.

    # Pre-transpose / pre-cast 1x1-conv weights in the wrapper (layout plumbing).
    w1t = jnp.asarray(w1, jnp.float32).T             # (C, Cr)
    w2t = jnp.asarray(w2, jnp.float32).T             # (Cr, C)
    alpha_arr = jnp.asarray(alpha, jnp.float32).reshape(1)

    # Scoped-VMEM budget with headroom; never request the full physical VMEM.
    x_tile_bytes = b_tile * C * hw_tile * elem_bytes
    w_bytes = 2 * C * Cr * 4
    out_bytes = b_tile * C * elem_bytes
    acc_bytes = 2 * b_tile * C * 4
    n_buf = 3 if x_buffer_count is None else max(2, int(x_buffer_count)) + 1
    needed = n_buf * x_tile_bytes + 2 * (w_bytes + out_bytes) + acc_bytes + (4 << 20)
    vmem_limit = int(min(cap_limit, max(needed, 16 << 20)))

    x_spec_kwargs = {}
    if x_buffer_count is not None:
        # Sweep only if a profile shows exposed DMA (review item).
        x_spec_kwargs["pipeline_mode"] = pl.Buffered(int(x_buffer_count))
    x_spec = pl.BlockSpec((b_tile, C, hw_tile), lambda b, h: (b, 0, h),
                          **x_spec_kwargs)

    cost = pl.CostEstimate(
        flops=int(2 * B * C * HW + 2 * 2 * (2 * B) * C * Cr + 8 * B * C),
        transcendentals=int(2 * B * C),
        bytes_accessed=int(B * C * HW * elem_bytes + B * C * elem_bytes
                           + 2 * C * Cr * 4),
    )

    kernel = partial(channel_attention_kernel, inv_hw=1.0 / float(HW),
                     hw_total=HW, mask_hw_tail=mask_hw_tail)

    out = pl.pallas_call(
        kernel,
        out_shape=jax.ShapeDtypeStruct((B, C), x_nchw.dtype),
        grid_spec=pltpu.PrefetchScalarGridSpec(
            num_scalar_prefetch=0,
            grid=grid,
            in_specs=[
                x_spec,
                pl.BlockSpec((C, Cr), lambda b, h: (0, 0)),
                pl.BlockSpec((Cr, C), lambda b, h: (0, 0)),
                pl.BlockSpec(memory_space=pltpu.MemorySpace.SMEM),
            ],
            out_specs=pl.BlockSpec((b_tile, C), lambda b, h: (b, 0)),
            scratch_shapes=[
                pltpu.VMEM((2, b_tile, C), jnp.float32),   # [sum; max] slabs
            ],
        ),
        compiler_params=pltpu.CompilerParams(
            dimension_semantics=("parallel", "arbitrary"),
            vmem_limit_bytes=vmem_limit,
        ),
        cost_estimate=cost,
    )(x_flat, w1t, w2t, alpha_arr)

    return out.reshape(B, C, 1, 1)


def channel_attention_ref(x_nchw, w1, w2, alpha):
    # Pure-JAX reference for correctness checking.
    avg = jnp.mean(x_nchw, axis=(2, 3))
    mx = jnp.max(x_nchw, axis=(2, 3))

    def branch(p):
        h = p @ w1.T
        h = jnp.where(h > 0, h, alpha * h)
        return h @ w2.T

    out = branch(avg) + branch(mx)
    return jax.nn.sigmoid(out).reshape(*out.shape, 1, 1)


if __name__ == "__main__":
    key = jax.random.PRNGKey(0)
    kx1, kx2, kw1, kw2 = jax.random.split(key, 4)

    C = 32                       # in_planes (fc1 reduces to C // 16)
    Cr = C // 16
    w1 = jax.random.normal(kw1, (Cr, C), dtype=jnp.float32) * 0.1
    w2 = jax.random.normal(kw2, (C, Cr), dtype=jnp.float32) * 0.1
    alpha = 0.25                 # nn.PReLU(num_parameters=1, init=0.25)

    # Case 1: auto tiling -> single full-HW block (longest contiguous DMA runs).
    x1 = jax.random.normal(kx1, (2, C, 16, 16), dtype=jnp.float32)
    y1 = channel_attention(x1, w1, w2, alpha)
    jax.block_until_ready(y1)
    y1_ref = channel_attention_ref(x1, w1, w2, alpha)
    assert y1.shape == (2, C, 1, 1)
    assert jnp.allclose(y1, y1_ref, atol=1e-5, rtol=1e-5)

    # Case 2: forced hw_tile=128 with HW=196 -> exercises multi-step
    # accumulation AND the masked cdiv HW tail (196 = 128 + 68).
    x2 = jax.random.normal(kx2, (3, C, 14, 14), dtype=jnp.float32)
    y2 = channel_attention(x2, w1, w2, alpha, hw_tile=128)
    jax.block_until_ready(y2)
    y2_ref = channel_attention_ref(x2, w1, w2, alpha)
    assert y2.shape == (3, C, 1, 1)
    assert jnp.allclose(y2, y2_ref, atol=1e-5, rtol=1e-5)

    print("KERNEL_OK")
</pallas_src>

<mosaic_0001>
module attributes {stable_mosaic.version = 11 : i64} {
  func.func @channel_attention_kernel(%arg0: i32, %arg1: i32, %arg2: memref<2x32x256xf32, #tpu.memory_space<vmem>>, %arg3: memref<32x2xf32, #tpu.memory_space<vmem>>, %arg4: memref<2x32xf32, #tpu.memory_space<vmem>>, %arg5: memref<1xf32, #tpu.memory_space<smem>>, %arg6: memref<2x32xf32, #tpu.memory_space<vmem>>, %arg7: memref<2x2x32xf32, #tpu.memory_space<vmem>>) attributes {dimension_semantics = [#tpu.dimension_semantics<parallel>, #tpu.dimension_semantics<arbitrary>], iteration_bounds = array<i64: 1, 1>, scalar_prefetch = 0 : i64, scratch_operands = 1 : i64, tpu.core_type = #tpu.core_type<tc>, window_params = [{transform_indices = @transform_0, window_bounds = array<i64: 2, 32, 256>}, {pipeline_mode = #tpu.pipeline_mode<synchronous>, transform_indices = @transform_1, window_bounds = array<i64: 32, 2>}, {pipeline_mode = #tpu.pipeline_mode<synchronous>, transform_indices = @transform_2, window_bounds = array<i64: 2, 32>}, {transform_indices = @transform_3, window_bounds = array<i64: 1>}, {transform_indices = @transform_4, window_bounds = array<i64: 2, 32>}]} {
    %c0 = arith.constant 0 : index
    %c0_0 = arith.constant 0 : index
    %c0_1 = arith.constant 0 : index
    %0 = vector.load %arg2[%c0, %c0_0, %c0_1] : memref<2x32x256xf32, #tpu.memory_space<vmem>>, vector<2x32x256xf32>
    %cst = arith.constant dense<0.000000e+00> : vector<2x32xf32>
    %1 = vector.multi_reduction <add>, %0, %cst [2] : vector<2x32x256xf32> to vector<2x32xf32>
    %cst_2 = arith.constant dense<0xFF800000> : vector<2x32xf32>
    %2 = vector.multi_reduction <maximumf>, %0, %cst_2 [2] : vector<2x32x256xf32> to vector<2x32xf32>
    %c0_i32 = arith.constant 0 : i32
    %3 = arith.cmpi eq, %arg1, %c0_i32 : i32
    %4 = arith.extui %3 : i1 to i32
    %c0_i32_3 = arith.constant 0 : i32
    %5 = arith.cmpi ne, %4, %c0_i32_3 : i32
    scf.if %5 {
      %c0_8 = arith.constant 0 : index
      %c0_9 = arith.constant 0 : index
      %c0_10 = arith.constant 0 : index
      %12 = vector.load %arg7[%c0_8, %c0_9, %c0_10] : memref<2x2x32xf32, #tpu.memory_space<vmem>>, vector<1x2x32xf32>
      %13 = vector.shape_cast %12 : vector<1x2x32xf32> to vector<2x32xf32>
      %14 = vector.shape_cast %1 : vector<2x32xf32> to vector<1x2x32xf32>
      tpu.vector_store %arg7[%c0_8, %c0_9, %c0_10], %14 {strides = array<i32>} : memref<2x2x32xf32, #tpu.memory_space<vmem>>, vector<1x2x32xf32>,
      %c1 = arith.constant 1 : index
      %c0_11 = arith.constant 0 : index
      %c0_12 = arith.constant 0 : index
      %15 = vector.load %arg7[%c1, %c0_11, %c0_12] : memref<2x2x32xf32, #tpu.memory_space<vmem>>, vector<1x2x32xf32>
      %16 = vector.shape_cast %15 : vector<1x2x32xf32> to vector<2x32xf32>
      %17 = vector.shape_cast %2 : vector<2x32xf32> to vector<1x2x32xf32>
      tpu.vector_store %arg7[%c1, %c0_11, %c0_12], %17 {strides = array<i32>} : memref<2x2x32xf32, #tpu.memory_space<vmem>>, vector<1x2x32xf32>,
    } else {
    }
    %c0_i32_4 = arith.constant 0 : i32
    %6 = arith.cmpi sgt, %arg1, %c0_i32_4 : i32
    %7 = arith.extui %6 : i1 to i32
    %c0_i32_5 = arith.constant 0 : i32
    %8 = arith.cmpi ne, %7, %c0_i32_5 : i32
    scf.if %8 {
      %c0_8 = arith.constant 0 : index
      %c0_9 = arith.constant 0 : index
      %c0_10 = arith.constant 0 : index
      %12 = vector.load %arg7[%c0_8, %c0_9, %c0_10] : memref<2x2x32xf32, #tpu.memory_space<vmem>>, vector<1x2x32xf32>
      %13 = vector.shape_cast %12 : vector<1x2x32xf32> to vector<2x32xf32>
      %14 = arith.addf %13, %1 : vector<2x32xf32>
      %c0_11 = arith.constant 0 : index
      %c0_12 = arith.constant 0 : index
      %c0_13 = arith.constant 0 : index
      %15 = vector.load %arg7[%c0_11, %c0_12, %c0_13] : memref<2x2x32xf32, #tpu.memory_space<vmem>>, vector<1x2x32xf32>
      %16 = vector.shape_cast %15 : vector<1x2x32xf32> to vector<2x32xf32>
      %17 = vector.shape_cast %14 : vector<2x32xf32> to vector<1x2x32xf32>
      tpu.vector_store %arg7[%c0_11, %c0_12, %c0_13], %17 {strides = array<i32>} : memref<2x2x32xf32, #tpu.memory_space<vmem>>, vector<1x2x32xf32>,
      %c1 = arith.constant 1 : index
      %c0_14 = arith.constant 0 : index
      %c0_15 = arith.constant 0 : index
      %18 = vector.load %arg7[%c1, %c0_14, %c0_15] : memref<2x2x32xf32, #tpu.memory_space<vmem>>, vector<1x2x32xf32>
      %19 = vector.shape_cast %18 : vector<1x2x32xf32> to vector<2x32xf32>
      %20 = arith.maximumf %19, %2 : vector<2x32xf32>
      %c1_16 = arith.constant 1 : index
      %c0_17 = arith.constant 0 : index
      %c0_18 = arith.constant 0 : index
      %21 = vector.load %arg7[%c1_16, %c0_17, %c0_18] : memref<2x2x32xf32, #tpu.memory_space<vmem>>, vector<1x2x32xf32>
      %22 = vector.shape_cast %21 : vector<1x2x32xf32> to vector<2x32xf32>
      %23 = vector.shape_cast %20 : vector<2x32xf32> to vector<1x2x32xf32>
      tpu.vector_store %arg7[%c1_16, %c0_17, %c0_18], %23 {strides = array<i32>} : memref<2x2x32xf32, #tpu.memory_space<vmem>>, vector<1x2x32xf32>,
    } else {
    }
    %c0_i32_6 = arith.constant 0 : i32
    %9 = arith.cmpi eq, %arg1, %c0_i32_6 : i32
    %10 = arith.extui %9 : i1 to i32
    %c0_i32_7 = arith.constant 0 : i32
    %11 = arith.cmpi ne, %10, %c0_i32_7 : i32
    scf.if %11 {
      %c0_8 = arith.constant 0 : index
      %c0_9 = arith.constant 0 : index
      %c0_10 = arith.constant 0 : index
      %12 = vector.load %arg7[%c0_8, %c0_9, %c0_10] : memref<2x2x32xf32, #tpu.memory_space<vmem>>, vector<1x2x32xf32>
      %13 = vector.shape_cast %12 : vector<1x2x32xf32> to vector<2x32xf32>
      %cst_11 = arith.constant 3.906250e-03 : f32
      %14 = vector.broadcast %cst_11 : f32 to vector<2x32xf32>
      %15 = arith.mulf %13, %14 : vector<2x32xf32>
      %c0_12 = arith.constant 0 : index
      %c0_13 = arith.constant 0 : index
      %c0_14 = arith.constant 0 : index
      %16 = vector.load %arg7[%c0_12, %c0_13, %c0_14] : memref<2x2x32xf32, #tpu.memory_space<vmem>>, vector<1x2x32xf32>
      %17 = vector.shape_cast %16 : vector<1x2x32xf32> to vector<2x32xf32>
      %18 = vector.shape_cast %15 : vector<2x32xf32> to vector<1x2x32xf32>
      tpu.vector_store %arg7[%c0_12, %c0_13, %c0_14], %18 {strides = array<i32>} : memref<2x2x32xf32, #tpu.memory_space<vmem>>, vector<1x2x32xf32>,
      %c0_15 = arith.constant 0 : index
      %c0_16 = arith.constant 0 : index
      %c0_17 = arith.constant 0 : index
      %19 = vector.load %arg7[%c0_15, %c0_16, %c0_17] : memref<2x2x32xf32, #tpu.memory_space<vmem>>, vector<2x2x32xf32>
      %20 = vector.shape_cast %19 : vector<2x2x32xf32> to vector<4x32xf32>
      %c0_18 = arith.constant 0 : index
      %21 = memref.load %arg5[%c0_18] : memref<1xf32, #tpu.memory_space<smem>>
      %c0_19 = arith.constant 0 : index
      %c0_20 = arith.constant 0 : index
      %22 = vector.load %arg3[%c0_19, %c0_20] : memref<32x2xf32, #tpu.memory_space<vmem>>, vector<32x2xf32>
      %cst_21 = arith.constant dense<0.000000e+00> : vector<4x2xf32>
      %23 = tpu.matmul %20, %22, %cst_21 {dimension_numbers = #tpu.dot_dimension_numbers<[1], [0], [0], [1], [0, 0, 1, 1], [], []>} : vector<4x32xf32>, vector<32x2xf32>, vector<4x2xf32> -> vector<4x2xf32>
      %cst_22 = arith.constant 0.000000e+00 : f32
      %24 = vector.broadcast %cst_22 : f32 to vector<4x2xf32>
      %25 = arith.cmpf ogt, %23, %24 : vector<4x2xf32>
      %26 = vector.broadcast %21 : f32 to vector<4x2xf32>
      %27 = arith.mulf %26, %23 : vector<4x2xf32>
      %28 = arith.select %25, %23, %27 : vector<4x2xi1>, vector<4x2xf32>
      %c0_23 = arith.constant 0 : index
      %c0_24 = arith.constant 0 : index
      %29 = vector.load %arg4[%c0_23, %c0_24] : memref<2x32xf32, #tpu.memory_space<vmem>>, vector<2x32xf32>
      %cst_25 = arith.constant dense<0.000000e+00> : vector<4x32xf32>
      %30 = tpu.matmul %28, %29, %cst_25 {dimension_numbers = #tpu.dot_dimension_numbers<[1], [0], [0], [1], [0, 0, 1, 1], [], []>} : vector<4x2xf32>, vector<2x32xf32>, vector<4x32xf32> -> vector<4x32xf32>
      %31 = vector.extract_strided_slice %30 {offsets = [0, 0], sizes = [2, 32], strides = [1, 1]} : vector<4x32xf32> to vector<2x32xf32>
      %32 = vector.extract_strided_slice %30 {offsets = [2, 0], sizes = [2, 32], strides = [1, 1]} : vector<4x32xf32> to vector<2x32xf32>
      %33 = arith.addf %31, %32 : vector<2x32xf32>
      %cst_26 = arith.constant 0.000000e+00 : f32
      %34 = vector.broadcast %cst_26 : f32 to vector<2x32xf32>
      %35 = arith.subf %34, %33 : vector<2x32xf32>
      %36 = math.exp %35 : vector<2x32xf32>
      %cst_27 = arith.constant 1.000000e+00 : f32
      %37 = vector.broadcast %cst_27 : f32 to vector<2x32xf32>
      %38 = arith.addf %37, %36 : vector<2x32xf32>
      %39 = tpu.reciprocal %38 : vector<2x32xf32> -> vector<2x32xf32>
      %c0_28 = arith.constant 0 : index
      %c0_29 = arith.constant 0 : index
      %40 = vector.load %arg6[%c0_28, %c0_29] : memref<2x32xf32, #tpu.memory_space<vmem>>, vector<2x32xf32>
      tpu.vector_store %arg6[%c0_28, %c0_29], %39 {strides = array<i32>} : memref<2x32xf32, #tpu.memory_space<vmem>>, vector<2x32xf32>,
    } else {
    }
    return
  }
  func.func @transform_0(%arg0: i32, %arg1: i32) -> (i32, i32, i32) {
    %c0_i32 = arith.constant 0 : i32
    %c0_i32_0 = arith.constant 0 : i32
    return %arg0, %c0_i32, %arg1 : i32, i32, i32
  }
  func.func @transform_1(%arg0: i32, %arg1: i32) -> (i32, i32) {
    %c0_i32 = arith.constant 0 : i32
    %c0_i32_0 = arith.constant 0 : i32
    %c0_i32_1 = arith.constant 0 : i32
    return %c0_i32, %c0_i32_0 : i32, i32
  }
  func.func @transform_2(%arg0: i32, %arg1: i32) -> (i32, i32) {
    %c0_i32 = arith.constant 0 : i32
    %c0_i32_0 = arith.constant 0 : i32
    %c0_i32_1 = arith.constant 0 : i32
    return %c0_i32, %c0_i32_0 : i32, i32
  }
  func.func @transform_3(%arg0: i32, %arg1: i32) -> i32 {
    %c0_i32 = arith.constant 0 : i32
    %c0_i32_0 = arith.constant 0 : i32
    return %c0_i32 : i32
  }
  func.func @transform_4(%arg0: i32, %arg1: i32) -> (i32, i32) {
    %c0_i32 = arith.constant 0 : i32
    %c0_i32_0 = arith.constant 0 : i32
    return %arg0, %c0_i32 : i32, i32
  }
}

</mosaic_0001>

<bundles_post_ra>
// kernel: tpu_custom_call.1
= control target key start
LH: loop header
LB: loop body
LE: loop exit
PB: predicated region body
PF: predicated region fallthrough
CT: control target
= control target key end

     0   :  { %10 = vsyncpa [#allocation5], 0  ;;  %s483_s0 = inlined_call_operand.hbm [shape: f32[2,32,256], index: 0, kind: input, shape index: {}]   ;;  %s484_s1 = inlined_call_operand.vmem [shape: f32[32,2], index: 1, kind: input, shape index: {}]   ;;  %s485_s2 = inlined_call_operand.vmem [shape: f32[2,32], index: 2, kind: input, shape index: {}]   ;;  %s486_s3 = inlined_call_operand.<no memory space> [shape: f32[1], index: 3, kind: input, shape index: {}]   ;;  %s487_s4 = inlined_call_operand.hbm [shape: f32[2,32], index: 4, kind: output, shape index: {}]  }
   0x1   :  { %11 = vsyncpa [#allocation6], 0  ;;  %s16_s17 = sshll.u32 %s483_s0, 4  ;;  %s412_s18 = smov [#allocation4]   ;;  %s17_s17 = int_to_ptr.hbm [resolvable:$true] %s16_s17 }
   0x2   :  { %s18_s19 = sshll.u32 %s412_s18, 4  ;;  %s413_s20 = smov 256   ;;  %s19_s19 = int_to_ptr.vmem [resolvable:$true] %s18_s19 }
   0x3   :  { %s414_s21 = smov 16  }
   0x4   :  { %24 = dma.hbm_to_vmem [thread:$0]  %s17_s17, 2048, %s19_s19, [#allocation5], %s413_s20, %s413_s20, %s414_s21  }
   0x5   :  { %408 = dma.done.wait [#allocation5], 2048  }
   0x6   :  { %409 = vsyncadd [#allocation5], 4294965248  ;;  %v43_v0 = vld [vmem:[#allocation4 + $0x40] sm:$0xff]  ;;  %v44_v1 = vld [vmem:[#allocation4 + $0x48] sm:$0xff]  ;;  %v111_v33 = vlaneseq  ;;  %vm116_vm0 = vcmask 130112   ;;  %vm120_vm1 = vcmask 195712  }
   0x7   :  { %v35_v2 = vld [vmem:[#allocation4] sm:$0xff]  ;;  %v63_v3 = vadd.f32 %v44_v1, %v43_v0  ;;  %v36_v4 = vld [vmem:[#allocation4 + $0x8] sm:$0xff]  ;;  %v45_v9 = vld [vmem:[#allocation4 + $0x50] sm:$0xff]  ;;  %v87_v25 = vmax.f32 %v43_v0, %v44_v1  ;;  %vm124_vm2 = vcmask 261312   ;;  %vm133_vm3 = vcmask 1041409   ;;  %s339_s8 = sshll.u32 %s487_s4, 4  ;;  %s340_s8 = int_to_ptr.hbm [resolvable:$true] %s339_s8 }
   0x8   :  { %v39_v5 = vld [vmem:[#allocation4 + $0x20] sm:$0xff]  ;;  %v40_v6 = vld [vmem:[#allocation4 + $0x28] sm:$0xff]  ;;  %v51_v7 = vadd.f32 %v36_v4, %v35_v2  ;;  %v46_v10 = vld [vmem:[#allocation4 + $0x58] sm:$0xff]  ;;  %v75_v24 = vmax.f32 %v35_v2, %v36_v4  ;;  %v112_v36 = vand.u32 127, %v111_v33  ;;  %vm136_vm4 = vcmask 254976  }
   0x9   :  { %v57_v8 = vadd.f32 %v40_v6, %v39_v5  ;;  %64 = vadd.xlane.f32.xlu1 %v63_v3  ;;  %v37_v11 = vld [vmem:[#allocation4 + $0x10] sm:$0xff]  ;;  %v38_v12 = vld [vmem:[#allocation4 + $0x18] sm:$0xff]  ;;  %v47_v13 = vld [vmem:[#allocation4 + $0x60] sm:$0xff]  ;;  %v66_v15 = vadd.f32 %v46_v10, %v45_v9  ;;  %v90_v27 = vmax.f32 %v45_v9, %v46_v10  ;;  %v81_v29 = vmax.f32 %v39_v5, %v40_v6 }
   0xa   :  { %52 = vadd.xlane.f32.xlu0 %v51_v7  ;;  %v48_v14 = vld [vmem:[#allocation4 + $0x68] sm:$0xff]  ;;  %v54_v16 = vadd.f32 %v38_v12, %v37_v11  ;;  %v49_v18 = vld [vmem:[#allocation4 + $0x70] sm:$0xff]  ;;  %v50_v19 = vld [vmem:[#allocation4 + $0x78] sm:$0xff]  ;;  %v78_v26 = vmax.f32 %v37_v11, %v38_v12  ;;  %v114_v37 = vadd.s32 4294967288, %v112_v36  ;;  %v118_v41 = vadd.s32 4294967280, %v112_v36 }
   0xb   :  { %58 = vadd.xlane.f32.xlu2 %v57_v8  ;;  %v69_v17 = vadd.f32 %v48_v14, %v47_v13  ;;  %v41_v20 = vld [vmem:[#allocation4 + $0x30] sm:$0xff]  ;;  %v42_v21 = vld [vmem:[#allocation4 + $0x38] sm:$0xff]  ;;  %v72_v22 = vadd.f32 %v50_v19, %v49_v18  ;;  %v93_v28 = vmax.f32 %v47_v13, %v48_v14  ;;  %v96_v31 = vmax.f32 %v49_v18, %v50_v19  ;;  %v245_v49 = vld [vmem:[%s484_s1 + $0x10] sm:$0xff] }
   0xc   :  { %v60_v23 = vadd.f32 %v42_v21, %v41_v20  ;;  %v84_v30 = vmax.f32 %v41_v20, %v42_v21  ;;  %v122_v45 = vadd.s32 4294967272, %v112_v36  ;;  %v246_v48 = vld [vmem:[%s484_s1 + $0x18] sm:$0xff]  ;;  %v244_v54 = vld [vmem:[%s484_s1 + $0x8] sm:$0xff]  ;;  %v243_v60 = vld [vmem:[%s484_s1] sm:$0xff]  ;;  %vm253_vm5 = vcmask 261120  }
   0xd   :  { %268 = vmatpush.msra.mxu0 %v246_v48  ;;  %vm285_vm6 = vcmask 1041408   ;;  %vm281_vm8 = vcmask 15360  }
   0xf   :  { %269 = vmatpush.msra.mxu0 %v245_v49 }
  0x11   :  { %67 = vadd.xlane.f32.xlu1 %v66_v15  ;;  %270 = vmatpush.msra.mxu0 %v244_v54 }
  0x12   :  { %55 = vadd.xlane.f32.xlu0 %v54_v16 }
  0x13   :  { %70 = vadd.xlane.f32.xlu2 %v69_v17  ;;  %271 = vmatpush.msra.mxu0 %v243_v60 }
  0x19   :  { %73 = vadd.xlane.f32.xlu1 %v72_v22 }
  0x1a   :  { %61 = vadd.xlane.f32.xlu0 %v60_v23 }
  0x1b   :  { %76 = vmax.xlane.f32.xlu2 %v75_v24 }
  0x21   :  { %88 = vmax.xlane.f32.xlu1 %v87_v25 }
  0x22   :  { %79 = vmax.xlane.f32.xlu0 %v78_v26 }
  0x23   :  { %91 = vmax.xlane.f32.xlu2 %v90_v27 }
  0x29   :  { %94 = vmax.xlane.f32.xlu1 %v93_v28  ;;  %v280_v28 = vld [vmem:[%s485_s2] sm:$0x3]  ;;  %s415_s2 = smov [#allocation7]  }
  0x2a   :  { %82 = vmax.xlane.f32.xlu0 %v81_v29  ;;  %350 = vmatpush.msk.msra.mxu1 %vm285_vm6, %v280_v28  ;;  %v277_v29 = vstv %s486_s3  ;;  %s337_s3 = sshll.u32 %s415_s2, 4  ;;  %s338_s3 = int_to_ptr.vmem [resolvable:$true] %s337_s3 }
  0x2b   :  { %85 = vmax.xlane.f32.xlu2 %v84_v30 }
  0x32   :  { %97 = vmax.xlane.f32.xlu0 %v96_v31 }
  0x7c   :  { %v65_v32 = vpop.xlane.xlu1 %64 }
  0x7d   :  { %v53_v34 = vpop.xlane.xlu0 %52  ;;  %v126_v42 = vperm.slane %v65_v32, %v112_v36 }
  0x7e   :  { %v59_v35 = vpop.xlane.xlu2 %58  ;;  %v113_v46 = vperm.slane %v53_v34, %v112_v36 }
  0x7f   :  { %v119_v50 = vperm.slane %v59_v35, %v118_v41 }
  0x84   :  { %v68_v38 = vpop.xlane.xlu1 %67 }
  0x85   :  { %v56_v39 = vpop.xlane.xlu0 %55  ;;  %v127_v43 = vperm.slane %v68_v38, %v114_v37 }
  0x86   :  { %v71_v40 = vpop.xlane.xlu2 %70  ;;  %v115_v44 = vperm.slane %v56_v39, %v114_v37 }
  0x87   :  { %v129_v47 = vperm.slane %v71_v40, %v118_v41  ;;  %v128_v51 = vsel %vm116_vm0, %v127_v43, %v126_v42 }
  0x88   :  { %v117_v52 = vsel %vm116_vm0, %v115_v44, %v113_v46 }
  0x89   :  { %v130_v58 = vsel %vm120_vm1, %v129_v47, %v128_v51  ;;  %v121_v62 = vsel %vm120_vm1, %v119_v50, %v117_v52 }
  0x8c   :  { %v74_v53 = vpop.xlane.xlu1 %73 }
  0x8d   :  { %v131_v55 = vperm.slane %v74_v53, %v122_v45  ;;  %v62_v56 = vpop.xlane.xlu0 %61 }
  0x8e   :  { %v77_v57 = vpop.xlane.xlu2 %76  ;;  %v123_v59 = vperm.slane %v62_v56, %v122_v45 }
  0x8f   :  { %v132_v61 = vsel %vm124_vm2, %v131_v55, %v130_v58  ;;  %v146_v7 = vperm.slane %v77_v57, %v112_v36 }
  0x90   :  { %v125_v63 = vsel %vm124_vm2, %v123_v59, %v121_v62 }
  0x91   :  { %v134_v0 = vsel %vm133_vm3, %v132_v61, %v125_v63 }
  0x92   :  { %137 = vst.msk [vmem:[#allocation2] sm:$0x3] %vm136_vm4, %v134_v0 }
  0x94   :  { %v89_v2 = vpop.xlane.xlu1 %88 }
  0x95   :  { %v80_v1 = vpop.xlane.xlu0 %79  ;;  %v153_v8 = vperm.slane %v89_v2, %v112_v36 }
  0x96   :  { %v92_v3 = vpop.xlane.xlu2 %91  ;;  %v147_v9 = vperm.slane %v80_v1, %v114_v37 }
  0x97   :  { %v154_v10 = vperm.slane %v92_v3, %v114_v37 }
  0x98   :  { %v148_v16 = vsel %vm116_vm0, %v147_v9, %v146_v7 }
  0x99   :  { %v236_v4 = vld [vmem:[#allocation2] sm:$0x3]  ;;  %v155_v17 = vsel %vm116_vm0, %v154_v10, %v153_v8 }
  0x9a   :  { %v237_v5 = vmul.f32 0.00390625, %v236_v4 }
  0x9c   :  { %239 = vst.msk [vmem:[#allocation2] sm:$0x3] %vm136_vm4, %v237_v5  ;;  %v95_v11 = vpop.xlane.xlu1 %94 }
  0x9d   :  { %v83_v6 = vpop.xlane.xlu0 %82  ;;  %v156_v14 = vperm.slane %v95_v11, %v118_v41 }
  0x9e   :  { %v149_v12 = vperm.slane %v83_v6, %v118_v41  ;;  %v86_v13 = vpop.xlane.xlu2 %85 }
  0x9f   :  { %v151_v18 = vperm.slane %v86_v13, %v122_v45  ;;  %v157_v22 = vsel %vm120_vm1, %v156_v14, %v155_v17 }
  0xa0   :  { %v150_v19 = vsel %vm120_vm1, %v149_v12, %v148_v16 }
  0xa1   :  { %v152_v23 = vsel %vm124_vm2, %v151_v18, %v150_v19 }
  0xa3   :  { %v240_v15 = vld [vmem:[#allocation2] sm:$0x3] }
  0xa4   :  { %249 = vst [vmem:[#allocation1] ss:$4 sm:$0xff] %v240_v15 }
  0xa5   :  { %v98_v20 = vpop.xlane.xlu0 %97 }
  0xa6   :  { %v158_v21 = vperm.slane %v98_v20, %v122_v45 }
  0xa8   :  { %v159_v24 = vsel %vm124_vm2, %v158_v21, %v157_v22 }
  0xa9   :  { %v160_v25 = vsel %vm133_vm3, %v159_v24, %v152_v23 }
  0xaa   :  { %163 = vst.msk [vmem:[#allocation2 + $0x2] sm:$0x3] %vm136_vm4, %v160_v25 }
  0xb1   :  { %v241_v26 = vld [vmem:[#allocation2 + $0x2] sm:$0x3] }
  0xb2   :  { %251 = vst [vmem:[#allocation1 + $0x1] ss:$4 sm:$0xff] %v241_v26 }
  0xb9   :  { %v252_v27 = vld.sshfl [vmem:[#allocation1] sm:$0xff pattern:$0x73625140] }
  0xba   :  { %349 = vmatmul.msk.f32.vlgmr.msra.gmra.mxu0 %vm253_vm5, %v252_v27 }
 0x137   :  { %v273_v30 = vpop.f32.mrf.mxu0 }
 0x138   :  { %vm276_vm7 = vcmp.gt.f32.partialorder %v273_v30, 0.0  ;;  %v278_v31 = vmul.f32 %v277_v29, %v273_v30 }
 0x13a   :  { %v279_v32 = vsel %vm276_vm7, %v273_v30, %v278_v31 }
 0x13b   :  { %351 = vmatmul.msk.f32.vlgmr.msra.gmra.mxu1 %vm281_vm8, %v279_v32 }
 0x1b8   :  { %v306_v33 = vpop.f32.mrf.mxu1 }
 0x1b9   :  { %v310_v34 = vrot.slane %v306_v33, 2 }
 0x1bb   :  { %v312_v35 = vadd.f32 %v310_v34, %v306_v33 }
 0x1bd   :  { %v313_v36 = vsub.f32 0.0, %v312_v35 }
 0x1bf   :  { %v314_v37 = vmul.f32 1.442695, %v313_v36 }
 0x1c1   :  { %356 = vpow2.f32 %v314_v37 }
 0x1c7   :  { %v357_v38 = vpop.eup %356 }
 0x1c8   :  { %v316_v39 = vadd.f32 1.0, %v357_v38 }
 0x1ca   :  { %358 = vrcp.f32 %v316_v39  ;;  %v328_v43 = vand.u32 2147483648, %v316_v39  ;;  %v326_v45 = vand.u32 2147483647, %v316_v39  ;;  %vm322_vm10 = vweird.f32 %v316_v39 }
 0x1cc   :  { %v329_v47 = vor.u32 1.1754944e-38, %v328_v43  ;;  %vm327_vm12 = vcmp.eq.f32.partialorder %v326_v45, 8.507059e+37 }
 0x1d0   :  { %v359_v40 = vpop.eup %358 }
 0x1d1   :  { %v318_v41 = vmul.f32 %v359_v40, %v316_v39  ;;  %vm323_vm9 = vweird.f32 %v359_v40 }
 0x1d2   :  { %vm324_vm11 = vmor %vm322_vm10, %vm323_vm9 }
 0x1d3   :  { %v319_v42 = vsub.f32 1.0, %v318_v41 }
 0x1d5   :  { %v320_v44 = vmul.f32 %v359_v40, %v319_v42 }
 0x1d7   :  { %v321_v46 = vadd.f32 %v359_v40, %v320_v44 }
 0x1d9   :  { %v325_v48 = vsel %vm324_vm11, %v359_v40, %v321_v46 }
 0x1da   :  { %v330_v49 = vsel %vm327_vm12, %v329_v47, %v325_v48 }
 0x1db   :  { %331 = vst.msk [vmem:[#allocation7] sm:$0x3] %vm136_vm4, %v330_v49 }
 0x1dc   :  { %342 = dma.vmem_to_hbm [thread:$0]  %s338_s3, 32, %s340_s8, [#allocation6]  }
 0x1dd   :  { %410 = dma.done.wait [#allocation6], 32  }
 0x1de   :  { %411 = vsyncadd [#allocation6], 4294967264 }
 0x1df   :  { %347 = vsyncpa [#allocation5], 1 }
 0x1e0   :  { %348 = vsyncpa [#allocation6], 1 }

</bundles_post_ra>
